<compile_context>
chip_gen: v6e
topology: v6e:2x2x1
jax: 0.10.0
libtpu: 0.0.40
codegen_flags: <defaults>
</compile_context>

<pallas_src>
import functools

import jax
import jax.numpy as jnp
from jax.experimental import pallas as pl
from jax.experimental.pallas import tpu as pltpu

_MIB = 1024 * 1024


def _round_up(x: int, m: int) -> int:
    return ((x + m - 1) // m) * m


def _cdiv(a: int, b: int) -> int:
    return (a + b - 1) // b


def _vmem_budget_bytes() -> int:
    """Per-generation usable VMEM budget (physical minus compiler headroom)."""
    phys = 64 * _MIB
    try:
        info = pltpu.get_tpu_info()
        v = int(getattr(info, "vmem_capacity_bytes", 0) or 0)
        if v > 0:
            phys = v
    except Exception:
        pass
    if phys <= 64 * _MIB:
        # v7x-class part: leave ~12 MiB for compiler internal scratch / semaphores.
        return phys - 12 * _MIB
    # v5e / v6e (128 MiB physical): allow big tiles, keep ~16 MiB headroom.
    return min(phys - 16 * _MIB, 112 * _MIB)


def _apply_dropout(y, seed_ref, dropout_p: float):
    # Inverted dropout via HW PRNG; integer-threshold compare on raw bits
    # (no shift-to-float path), scale folded into one multiply.
    pltpu.prng_seed(seed_ref[0] + pl.program_id(0))
    bits = pltpu.bitcast(pltpu.prng_random_bits(y.shape), jnp.uint32)
    thresh = jnp.uint32(min(int(dropout_p * 4294967296.0), 4294967295))
    keep = bits >= thresh                           # P(keep) ~= 1 - p
    return jnp.where(keep, y, 0.0) * jnp.float32(1.0 / (1.0 - dropout_p))


def _ffn_kernel_resident(seed_ref, x_ref, w1_ref, b1_ref, w2_ref, b2_ref, o_ref,
                         *, dropout_p: float, training: bool):
    # Weights fully resident: both matmuls over the full d_ff in one step.
    h = jnp.dot(x_ref[...], w1_ref[...], preferred_element_type=jnp.float32)
    h = jnp.maximum(h + b1_ref[...], 0.0)
    y = jnp.dot(h.astype(w2_ref.dtype), w2_ref[...],
                preferred_element_type=jnp.float32)
    y = y + b2_ref[...]
    if training and dropout_p > 0.0:
        y = _apply_dropout(y, seed_ref, dropout_p)
    o_ref[...] = y.astype(o_ref.dtype)


def _ffn_kernel_tiled(seed_ref, x_ref, w1_ref, b1_ref, w2_ref, b2_ref, o_ref,
                      acc_ref, *, dropout_p: float, training: bool):
    k = pl.program_id(1)

    @pl.when(k == 0)
    def _():
        acc_ref[...] = jnp.zeros_like(acc_ref)

    # First linear block + bias + ReLU:  (tm, d_model) @ (d_model, tf) -> (tm, tf)
    h = jnp.dot(x_ref[...], w1_ref[...], preferred_element_type=jnp.float32)
    h = jnp.maximum(h + b1_ref[...], 0.0)

    # Partial second linear, accumulated over the d_ff grid axis into f32 scratch.
    acc_ref[...] += jnp.dot(h.astype(w2_ref.dtype), w2_ref[...],
                            preferred_element_type=jnp.float32)

    @pl.when(k == pl.num_programs(1) - 1)
    def _():
        y = acc_ref[...] + b2_ref[...]
        if training and dropout_p > 0.0:
            y = _apply_dropout(y, seed_ref, dropout_p)
        o_ref[...] = y.astype(o_ref.dtype)


def make_feed_forward(w1, b1, w2, b2, *, dropout_p: float = 0.0,
                      compute_dtype=None, tm: int = 512, tf: int = 2048,
                      force_tiled: bool = False):
    """Pre-pads/casts weights once and returns `apply(x, training, seed)`.

    w1: (d_model, d_ff), b1: (d_ff,), w2: (d_ff, d_model), b2: (d_model,).
    compute_dtype: optional (e.g. jnp.bfloat16, recommended on v6e/v7x) dtype
    for x/W1/W2 on the MXU; accumulation, biases and epilogue stay f32.
    """
    d_model, d_ff = int(w1.shape[0]), int(w1.shape[1])
    cdt = jnp.dtype(compute_dtype) if compute_dtype is not None else jnp.dtype(w1.dtype)
    # bf16 packs 16 rows per sublane tile; f32 packs 8.
    row_align = 16 if cdt == jnp.dtype(jnp.bfloat16) else 8
    itm = cdt.itemsize
    dropout_p = float(dropout_p)

    d_model_p = _round_up(d_model, 128)
    d_ff_128 = _round_up(d_ff, 128)
    budget = _vmem_budget_bytes()

    # --- choose resident vs tiled from the weight footprint alone -----------
    # Count weights double-buffered (conservative), reserve room for x/out/h.
    resident_w_bytes = 2 * 2 * d_model_p * d_ff_128 * itm
    act_reserve = 16 * _MIB
    resident = (not force_tiled) and (resident_w_bytes + act_reserve <= budget)

    if resident:
        d_ff_p = d_ff_128
        tf_sel = d_ff_p
    else:
        tf_sel = max(128, _round_up(min(tf, d_ff_128), 128))
        # Shrink tf until the double-buffered per-step weight blocks fit
        # comfortably in half the budget (rest goes to activations/scratch).
        while tf_sel > 128 and 4 * d_model_p * tf_sel * itm > budget // 2:
            tf_sel = max(128, _round_up(tf_sel // 2, 128))
        d_ff_p = _round_up(d_ff, tf_sel)

    # --- hoist weight cast / pad out of the per-call hot path ---------------
    w1p = w1.astype(cdt)
    w2p = w2.astype(cdt)
    if (d_model_p != d_model) or (d_ff_p != d_ff):
        w1p = jnp.pad(w1p, ((0, d_model_p - d_model), (0, d_ff_p - d_ff)))
        w2p = jnp.pad(w2p, ((0, d_ff_p - d_ff), (0, d_model_p - d_model)))
    b1p = jnp.pad(b1.astype(jnp.float32), (0, d_ff_p - d_ff)).reshape(1, d_ff_p)
    b2p = jnp.pad(b2.astype(jnp.float32), (0, d_model_p - d_model)).reshape(1, d_model_p)

    tm_default = max(row_align, _round_up(tm, row_align))

    def apply(x, *, training: bool = False, seed: int = 0):
        assert x.shape[-1] == d_model, "last dim of x must equal d_model"
        orig_shape = x.shape
        out_dtype = x.dtype

        # Degenerate dropout: p >= 1 zeroes everything (matches nn.Dropout(1.0)).
        if training and dropout_p >= 1.0:
            return jnp.zeros(orig_shape, dtype=out_dtype)

        x2 = x.reshape(-1, d_model)
        if x2.dtype != cdt:
            x2 = x2.astype(cdt)
        M = x2.shape[0]
        out_itm = jnp.dtype(out_dtype).itemsize

        # Row tile: big by default for weight reuse (matters on the tiled
        # path), clamped for tiny problems; split so the "parallel" axis has
        # >= 2 tiles and both v7x TensorCores get work.
        tm_sel = min(tm_default, _round_up(M, row_align))
        tm_sel = max(row_align, _round_up(tm_sel, row_align))
        if _round_up(M, tm_sel) // tm_sel == 1 and M > row_align:
            tm_sel = max(row_align, _round_up(_cdiv(M, 2), row_align))

        def est(tm_v: int) -> int:
            act = (2 * tm_v * d_model_p * itm            # x blocks (double-buffered)
                   + 2 * tm_v * d_model_p * out_itm      # out blocks
                   + tm_v * (d_ff_p if resident else tf_sel) * 4)  # h intermediate
            if resident:
                w = 2 * 2 * d_model_p * d_ff_p * itm     # W1 + W2, double-buffered
            else:
                w = 2 * 2 * d_model_p * tf_sel * itm     # per-step W1/W2 blocks
                act += tm_v * d_model_p * 4              # f32 accumulator scratch
            bias = 16 * (d_ff_p + d_model_p) * 4
            return act + w + bias

        # Validate the footprint against the per-generation budget; shrink the
        # row tile (never the lane dims) instead of silently under-provisioning.
        while est(tm_sel) > budget and tm_sel > row_align:
            tm_sel = max(row_align, _round_up(tm_sel // 2, row_align))
        if est(tm_sel) > budget:
            raise ValueError(
                "FFN tile footprint exceeds the VMEM budget; reduce tf/d_ff or "
                "use a narrower compute_dtype.")

        M_p = _round_up(M, tm_sel)
        if M_p != M or d_model_p != d_model:
            # Zero pads contribute exactly 0; padded rows/cols sliced off below.
            x2 = jnp.pad(x2, ((0, M_p - M), (0, d_model_p - d_model)))

        vmem_limit = int(min(budget, max(int(est(tm_sel) * 1.4), 32 * _MIB)))
        seed_arr = jnp.asarray([seed], dtype=jnp.int32)
        kern_kwargs = dict(dropout_p=dropout_p, training=bool(training))

        if resident:
            kernel = functools.partial(_ffn_kernel_resident, **kern_kwargs)
            grid = (M_p // tm_sel,)
            in_specs = [
                pl.BlockSpec((tm_sel, d_model_p), lambda i, seed: (i, 0)),
                pl.BlockSpec((d_model_p, d_ff_p), lambda i, seed: (0, 0)),
                pl.BlockSpec((1, d_ff_p),         lambda i, seed: (0, 0)),
                pl.BlockSpec((d_ff_p, d_model_p), lambda i, seed: (0, 0)),
                pl.BlockSpec((1, d_model_p),      lambda i, seed: (0, 0)),
            ]
            out_specs = pl.BlockSpec((tm_sel, d_model_p), lambda i, seed: (i, 0))
            scratch_shapes = []
            dim_sem = ("parallel",)
        else:
            kernel = functools.partial(_ffn_kernel_tiled, **kern_kwargs)
            grid = (M_p // tm_sel, d_ff_p // tf_sel)
            in_specs = [
                pl.BlockSpec((tm_sel, d_model_p), lambda i, k, seed: (i, 0)),
                pl.BlockSpec((d_model_p, tf_sel), lambda i, k, seed: (0, k)),
                pl.BlockSpec((1, tf_sel),         lambda i, k, seed: (0, k)),
                pl.BlockSpec((tf_sel, d_model_p), lambda i, k, seed: (k, 0)),
                pl.BlockSpec((1, d_model_p),      lambda i, k, seed: (0, 0)),
            ]
            out_specs = pl.BlockSpec((tm_sel, d_model_p), lambda i, k, seed: (i, 0))
            scratch_shapes = [pltpu.VMEM((tm_sel, d_model_p), jnp.float32)]
            dim_sem = ("parallel", "arbitrary")

        out = pl.pallas_call(
            kernel,
            out_shape=jax.ShapeDtypeStruct((M_p, d_model_p), out_dtype),
            grid_spec=pltpu.PrefetchScalarGridSpec(
                num_scalar_prefetch=1,
                grid=grid,
                in_specs=in_specs,
                out_specs=out_specs,
                scratch_shapes=scratch_shapes,
            ),
            compiler_params=pltpu.CompilerParams(
                dimension_semantics=dim_sem,
                vmem_limit_bytes=vmem_limit),
        )(seed_arr, x2, w1p, b1p, w2p, b2p)

        if M_p != M or d_model_p != d_model:
            out = out[:M, :d_model]
        return out.reshape(orig_shape)

    return apply


def feed_forward(x, w1, b1, w2, b2, *, dropout_p: float = 0.0,
                 training: bool = False, seed: int = 0,
                 tm: int = 512, tf: int = 2048, compute_dtype=None,
                 force_tiled: bool = False):
    """One-shot convenience wrapper: x (..., d_model) -> (..., d_model).

    For repeated calls with the same weights, build the closure once with
    make_feed_forward() so the weight cast/pad is hoisted out of the hot path.
    """
    apply = make_feed_forward(w1, b1, w2, b2, dropout_p=dropout_p,
                              compute_dtype=compute_dtype, tm=tm, tf=tf,
                              force_tiled=force_tiled)
    return apply(x, training=training, seed=seed)


if __name__ == "__main__":
    key = jax.random.PRNGKey(0)

    # ---- Test 1: resident-weights fast path (the common case) ----
    batch, seq, d_model, d_ff = 2, 8, 32, 64
    dropout_rate = 0.1  # applied only when training=True; eval here (matches module.eval()).

    kx, k1, k2, k3, k4, k5 = jax.random.split(key, 6)
    x = jax.random.normal(kx, (batch, seq, d_model), dtype=jnp.float32)

    lim1 = 1.0 / (d_model ** 0.5)
    lim2 = 1.0 / (d_ff ** 0.5)
    w1 = jax.random.uniform(k1, (d_model, d_ff), jnp.float32, -lim1, lim1)
    b1 = jax.random.uniform(k2, (d_ff,), jnp.float32, -lim1, lim1)
    w2 = jax.random.uniform(k3, (d_ff, d_model), jnp.float32, -lim2, lim2)
    b2 = jax.random.uniform(k4, (d_model,), jnp.float32, -lim2, lim2)

    y = feed_forward(x, w1, b1, w2, b2, dropout_p=dropout_rate, training=False)
    y = jax.block_until_ready(y)
    ref = jnp.maximum(x @ w1 + b1, 0.0) @ w2 + b2
    assert y.shape == x.shape
    assert jnp.allclose(y, ref, atol=1e-5, rtol=1e-5), "resident path mismatch"

    # ---- Test 2: tiled (d_ff reduction) fallback path ----
    d_ff2 = 256
    ka, kb, kc, kd = jax.random.split(k5, 4)
    lim2b = 1.0 / (d_ff2 ** 0.5)
    w1b = jax.random.uniform(ka, (d_model, d_ff2), jnp.float32, -lim1, lim1)
    b1b = jax.random.uniform(kb, (d_ff2,), jnp.float32, -lim1, lim1)
    w2b = jax.random.uniform(kc, (d_ff2, d_model), jnp.float32, -lim2b, lim2b)
    b2b = jax.random.uniform(kd, (d_model,), jnp.float32, -lim2b, lim2b)

    y2 = feed_forward(x, w1b, b1b, w2b, b2b, dropout_p=dropout_rate,
                      training=False, tf=128, force_tiled=True)
    y2 = jax.block_until_ready(y2)
    ref2 = jnp.maximum(x @ w1b + b1b, 0.0) @ w2b + b2b
    assert y2.shape == x.shape
    assert jnp.allclose(y2, ref2, atol=1e-5, rtol=1e-5), "tiled path mismatch"

    # TODO(synk): training-mode dropout uses the TPU HW PRNG, so it cannot
    # bit-match torch's dropout mask; semantics (inverted dropout) are identical.
    print("KERNEL_OK")
</pallas_src>

<mosaic_0001>
module attributes {stable_mosaic.version = 11 : i64} {
  func.func @_ffn_kernel_resident(%arg0: i32, %arg1: memref<1xi32, #tpu.memory_space<smem>>, %arg2: memref<8x128xf32, #tpu.memory_space<vmem>>, %arg3: memref<128x128xf32, #tpu.memory_space<vmem>>, %arg4: memref<1x128xf32, #tpu.memory_space<vmem>>, %arg5: memref<128x128xf32, #tpu.memory_space<vmem>>, %arg6: memref<1x128xf32, #tpu.memory_space<vmem>>, %arg7: memref<8x128xf32, #tpu.memory_space<vmem>>) attributes {dimension_semantics = [#tpu.dimension_semantics<parallel>], iteration_bounds = array<i64: 2>, scalar_prefetch = 1 : i64, scratch_operands = 0 : i64, tpu.core_type = #tpu.core_type<tc>, window_params = [{transform_indices = @transform_0, window_bounds = array<i64: 8, 128>}, {pipeline_mode = #tpu.pipeline_mode<synchronous>, transform_indices = @transform_1, window_bounds = array<i64: 128, 128>}, {pipeline_mode = #tpu.pipeline_mode<synchronous>, transform_indices = @transform_2, window_bounds = array<i64: 1, 128>}, {pipeline_mode = #tpu.pipeline_mode<synchronous>, transform_indices = @transform_3, window_bounds = array<i64: 128, 128>}, {pipeline_mode = #tpu.pipeline_mode<synchronous>, transform_indices = @transform_4, window_bounds = array<i64: 1, 128>}, {transform_indices = @transform_5, window_bounds = array<i64: 8, 128>}]} {
    %c0 = arith.constant 0 : index
    %c0_0 = arith.constant 0 : index
    %0 = vector.load %arg2[%c0, %c0_0] : memref<8x128xf32, #tpu.memory_space<vmem>>, vector<8x128xf32>
    %c0_1 = arith.constant 0 : index
    %c0_2 = arith.constant 0 : index
    %1 = vector.load %arg3[%c0_1, %c0_2] : memref<128x128xf32, #tpu.memory_space<vmem>>, vector<128x128xf32>
    %cst = arith.constant dense<0.000000e+00> : vector<8x128xf32>
    %2 = tpu.matmul %0, %1, %cst {dimension_numbers = #tpu.dot_dimension_numbers<[1], [0], [0], [1], [0, 0, 1, 1], [], []>} : vector<8x128xf32>, vector<128x128xf32>, vector<8x128xf32> -> vector<8x128xf32>
    %c0_3 = arith.constant 0 : index
    %c0_4 = arith.constant 0 : index
    %3 = vector.load %arg4[%c0_3, %c0_4] : memref<1x128xf32, #tpu.memory_space<vmem>>, vector<1x128xf32>
    %4 = vector.broadcast %3 : vector<1x128xf32> to vector<8x128xf32>
    %5 = arith.addf %2, %4 : vector<8x128xf32>
    %cst_5 = arith.constant 0.000000e+00 : f32
    %6 = vector.broadcast %cst_5 : f32 to vector<8x128xf32>
    %7 = arith.maximumf %5, %6 : vector<8x128xf32>
    %c0_6 = arith.constant 0 : index
    %c0_7 = arith.constant 0 : index
    %8 = vector.load %arg5[%c0_6, %c0_7] : memref<128x128xf32, #tpu.memory_space<vmem>>, vector<128x128xf32>
    %cst_8 = arith.constant dense<0.000000e+00> : vector<8x128xf32>
    %9 = tpu.matmul %7, %8, %cst_8 {dimension_numbers = #tpu.dot_dimension_numbers<[1], [0], [0], [1], [0, 0, 1, 1], [], []>} : vector<8x128xf32>, vector<128x128xf32>, vector<8x128xf32> -> vector<8x128xf32>
    %c0_9 = arith.constant 0 : index
    %c0_10 = arith.constant 0 : index
    %10 = vector.load %arg6[%c0_9, %c0_10] : memref<1x128xf32, #tpu.memory_space<vmem>>, vector<1x128xf32>
    %11 = vector.broadcast %10 : vector<1x128xf32> to vector<8x128xf32>
    %12 = arith.addf %9, %11 : vector<8x128xf32>
    %c0_11 = arith.constant 0 : index
    %c0_12 = arith.constant 0 : index
    %13 = vector.load %arg7[%c0_11, %c0_12] : memref<8x128xf32, #tpu.memory_space<vmem>>, vector<8x128xf32>
    tpu.vector_store %arg7[%c0_11, %c0_12], %12 {strides = array<i32>} : memref<8x128xf32, #tpu.memory_space<vmem>>, vector<8x128xf32>,
    return
  }
  func.func @transform_0(%arg0: i32, %arg1: memref<1xi32, #tpu.memory_space<smem>>) -> (i32, i32) {
    %c0_i32 = arith.constant 0 : i32
    %c0_i32_0 = arith.constant 0 : i32
    return %arg0, %c0_i32 : i32, i32
  }
  func.func @transform_1(%arg0: i32, %arg1: memref<1xi32, #tpu.memory_space<smem>>) -> (i32, i32) {
    %c0_i32 = arith.constant 0 : i32
    %c0_i32_0 = arith.constant 0 : i32
    %c0_i32_1 = arith.constant 0 : i32
    return %c0_i32, %c0_i32_0 : i32, i32
  }
  func.func @transform_2(%arg0: i32, %arg1: memref<1xi32, #tpu.memory_space<smem>>) -> (i32, i32) {
    %c0_i32 = arith.constant 0 : i32
    %c0_i32_0 = arith.constant 0 : i32
    %c0_i32_1 = arith.constant 0 : i32
    return %c0_i32, %c0_i32_0 : i32, i32
  }
  func.func @transform_3(%arg0: i32, %arg1: memref<1xi32, #tpu.memory_space<smem>>) -> (i32, i32) {
    %c0_i32 = arith.constant 0 : i32
    %c0_i32_0 = arith.constant 0 : i32
    %c0_i32_1 = arith.constant 0 : i32
    return %c0_i32, %c0_i32_0 : i32, i32
  }
  func.func @transform_4(%arg0: i32, %arg1: memref<1xi32, #tpu.memory_space<smem>>) -> (i32, i32) {
    %c0_i32 = arith.constant 0 : i32
    %c0_i32_0 = arith.constant 0 : i32
    %c0_i32_1 = arith.constant 0 : i32
    return %c0_i32, %c0_i32_0 : i32, i32
  }
  func.func @transform_5(%arg0: i32, %arg1: memref<1xi32, #tpu.memory_space<smem>>) -> (i32, i32) {
    %c0_i32 = arith.constant 0 : i32
    %c0_i32_0 = arith.constant 0 : i32
    return %arg0, %c0_i32 : i32, i32
  }
}

</mosaic_0001>

<bundles_post_ra>
// kernel: tpu_custom_call.1
= control target key start
LH: loop header
LB: loop body
LE: loop exit
PB: predicated region body
PF: predicated region fallthrough
CT: control target
= control target key end

     0   :  { %12 = vsyncpa [#allocation5], 0  ;;  %s1167_s0 = inlined_call_operand.<no memory space> [shape: s32[1], index: 0, kind: input, shape index: {}]   ;;  %s1168_s1 = inlined_call_operand.hbm [shape: f32[16,128], index: 1, kind: input, shape index: {}]   ;;  %s1169_s2 = inlined_call_operand.hbm [shape: f32[128,128], index: 2, kind: input, shape index: {}]   ;;  %s1170_s3 = inlined_call_operand.vmem [shape: f32[1,128], index: 3, kind: input, shape index: {}]   ;;  %s1171_s4 = inlined_call_operand.hbm [shape: f32[128,128], index: 4, kind: input, shape index: {}]   ;;  %s1172_s5 = inlined_call_operand.vmem [shape: f32[1,128], index: 5, kind: input, shape index: {}]   ;;  %s1173_s6 = inlined_call_operand.hbm [shape: f32[16,128], index: 6, kind: output, shape index: {}]  }
   0x1   :  { %14 = vsyncpa [#allocation5 + $0x1], 0 }
   0x2   :  { %15 = vsyncpa [#allocation8], 0 }
   0x3   :  { %16 = vsyncpa [#allocation6], 0 }
   0x4   :  { %18 = vsyncpa [#allocation6 + $0x1], 0  ;;  %s949_s0 = smov 0   ;;  %s951_s21 = smov 0  }
   0x5   :  { %s953_s22 = smov 0   ;;  %s955_s23 = smov 0  }
   0x6 LB: > { %s970_s24 = sadd.s32 4294967295, %s904_s23   ;;  %s563_s25 = sadd.s32 4294967294, %s904_s23   ;;  %s904_s23 = sphi %s955_s23, %s1195_s23   ;;  %s900_s22 = sphi %s953_s22, %s1194_s22   ;;  %s896_s21 = sphi %s951_s21, %s1193_s21   ;;  %s892_s0 = sphi %s949_s0, %s1192_s0  }
   0x7   : > { %p44_p0 = scmp.ne.s32.totalorder %s896_s21, %s892_s0  ;;  %p1174_p1 = scmp.eq.s32.totalorder %s970_s24, 0 }
   0x8   : > { %p158_p3 = scmp.eq.s32.totalorder %s563_s25, 1  ;;  %p564_p5 = scmp.ge.s32.totalorder %s904_s23, 1 }
   0x9   : > { %p979_p4 = por %p1174_p1, %p44_p0  ;;  %p165_p7 = scmp.lt.s32.totalorder %s904_s23, 3 }
   0xa   : > { %p984_p6 = por %p158_p3, %p44_p0  ;;  %s906_s29 = smov [#allocation7]  }
   0xb   : > { %s1178_s26 = scalar_select %p979_p4, 1, 0 }
   0xc   : > { %s1179_s27 = scalar_select %p984_p6, 1, 0 }
   0xd   : > { %p989_p8 = pnand %p564_p5, %p165_p7  ;;  %s177_s30 = sshll.u32 %s906_s29, 4  ;;  %s178_s30 = int_to_ptr.vmem [resolvable:$true] %s177_s30 }
   0xe   : > { %s907_s8 = smov [#allocation9]   ;;  %s767_s10 = scalar_lea.vmem %s178_s30, 2048 }
   0xf   : > { %s1180_s28 = scalar_select %p989_p8, 1, 0 }
  0x10   : > { %p697_p9 = pneg %p989_p8  ;;  %s193_s9 = sshll.u32 %s907_s8, 4  ;;  %s194_s9 = int_to_ptr.vmem [resolvable:$true] %s193_s9 }
  0x11   : > { %p768_p13 = scmp.ne.s32.totalorder %s178_s30, %s767_s10  ;;  %p775_p5 = scmp.lt.s32.totalorder %s178_s30, %s178_s30 }
  0x12   : > { %p998_p11 = pnand %p697_p9, %p1174_p1  ;;  %p776_p7 = scmp.lt.s32.totalorder %s767_s10, %s767_s10 }
  0x14   : > { %p758_p12 = pneg %p998_p11  ;;  %p777_p10 = por %p776_p7, %p775_p5 }
  0x16   : > { %p770_p0 = pnand %p768_p13, %p758_p12 }
  0x18   : > { %p771_p3 = pneg %p770_p0 }
  0x1a   : > { %p778_p9 = pnand %p777_p10, %p771_p3 }
  0x1c   : > { %781 = shalt.err (!%p778_p9)
}
  0x1d   : > { %s908_s11 = smov 128   ;;  %s909_s12 = smov 8  }
  0x1e   : > { %700 = dma.hbm_to_vmem [thread:$0]  (!%p998_p11), %s1169_s2, 2048, %s178_s30, [#allocation8], %s908_s11, %s908_s11, %s909_s12  }
  0x1f   : > { %s793_s15 = scalar_lea.vmem %s194_s9, 2048  ;;  %p801_p2 = scmp.lt.s32.totalorder %s194_s9, %s194_s9 }
  0x20   : > { %p794_p1 = scmp.ne.s32.totalorder %s194_s9, %s793_s15  ;;  %p802_p6 = scmp.lt.s32.totalorder %s793_s15, %s793_s15 }
  0x22   : > { %p796_p13 = pnand %p794_p1, %p758_p12  ;;  %p803_p5 = por %p802_p6, %p801_p2 }
  0x24   : > { %p797_p0 = pneg %p796_p13 }
  0x26   : > { %p804_p10 = pnand %p803_p5, %p797_p0 }
  0x28   : > { %807 = shalt.err (!%p804_p10)
}
  0x29   : > { %703 = dma.hbm_to_vmem [thread:$0]  (!%p998_p11), %s1171_s4, 2048, %s194_s9, [#allocation8], %s908_s11, %s908_s11, %s909_s12  }
  0x2a   : > { %s1021_s18 = sadd.s32 1, %s904_s23   ;;  %s31_s19 = sadd.s32 1, %s900_s22 }
  0x2b   : > { %s28_s20 = ssub.s32 %s904_s23, %s1021_s18  ;;  %p38_p1 = scmp.ne.s32.totalorder %s900_s22, %s896_s21 }
  0x2c   : > { %p29_p2 = scmp.eq.s32.totalorder %s28_s20, 0  ;;  %p39_p6 = scmp.eq.s32.totalorder %s904_s23, 0 }
  0x2d   : > { %p1182_p12 = scmp.eq.s32.totalorder %s970_s24, 1  ;;  %p714_p7 = scmp.lt.s32.totalorder %s904_s23, 2 }
  0x2e   : > { %s1037_s29 = scalar_select %p29_p2, %s900_s22, %s31_s19  }
  0x2f   : > { %p1031_p3 = por %p1182_p12, %p38_p1  ;;  %p40_p9 = por %p39_p6, %p38_p1 }
  0x30   : > { %s210_s30 = sand.u32 1, %s900_s22   ;;  %s569_s8 = sshll.u32 %s904_s23, 7 }
  0x31   : > { %s1183_s25 = scalar_select %p1031_p3, 1, 0 }
  0x32   : > { %s568_s7 = sshll.u32 %s210_s30, 3  ;;  %s1044_s11 = scalar_lea.hbm %s1168_s1, %s569_s8 }
  0x33   : > { %s214_s12 = scalar_lea.vmem [#allocation4], %s568_s7  ;;  %p1046_p11 = pnand %p714_p7, %p40_p9 }
  0x34   : > { %s221_s13 = sshll.u32 %s214_s12, 4  ;;  %s211_s15 = scalar_lea.sflag [#allocation5], %s210_s30  ;;  %s222_s13 = int_to_ptr.vmem [resolvable:$true] %s221_s13 }
  0x35   : > { %s808_s16 = scalar_lea.hbm %s1044_s11, 128  ;;  %p810_p0 = pneg %p1046_p11 }
  0x36   : > { %p809_p13 = scmp.ne.s32.totalorder %s1044_s11, %s808_s16  ;;  %s813_s20 = scalar_lea.hbm %s1168_s1, 256 }
  0x37   : > { %p814_p1 = scmp.lt.s32.totalorder %s1044_s11, %s1168_s1  ;;  %p815_p2 = scmp.lt.s32.totalorder %s813_s20, %s808_s16 }
  0x38   : > { %p811_p5 = pnand %p810_p0, %p809_p13 }
  0x39   : > { %p816_p6 = por %p815_p2, %p814_p1 }
  0x3a   : > { %p812_p10 = pneg %p811_p5 }
  0x3c   : > { %p817_p12 = pnand %p816_p6, %p812_p10 }
  0x3e   : > { %820 = shalt.err (!%p817_p12)
}
  0x3f   : > { %s821_s9 = scalar_lea.vmem %s222_s13, 128  ;;  %s910_s30 = smov [#allocation4]  }
  0x40   : > { %p822_p7 = scmp.ne.s32.totalorder %s222_s13, %s821_s9  ;;  %s826_s10 = sshll.u32 %s910_s30, 4  ;;  %s827_s10 = int_to_ptr.vmem [resolvable:$false] %s826_s10 }
  0x41   : > { %s828_s12 = scalar_lea.vmem %s827_s10, 256  ;;  %p829_p13 = scmp.lt.s32.totalorder %s222_s13, %s827_s10 }
  0x42   : > { %p824_p9 = pnand %p822_p7, %p810_p0  ;;  %p830_p5 = scmp.lt.s32.totalorder %s828_s12, %s821_s9 }
  0x44   : > { %p825_p3 = pneg %p824_p9  ;;  %p831_p4 = por %p830_p5, %p829_p13 }
  0x46   : > { %p832_p8 = pnand %p831_p4, %p825_p3 }
  0x48   : > { %835 = shalt.err (!%p832_p8)
}
  0x49   : > { %707 = dma.hbm_to_vmem [thread:$0]  (!%p1046_p11), %s1044_s11, 128, %s222_s13, %s211_s15  }
  0x4a   : > { %p1185_p10 = scmp.ne.s32.totalorder %s1180_s28, 0 }
  0x4b   : > { %s1067_s16 = sand.u32 (!%p1185_p10), 1, %s896_s21   ;;  %p1186_p4 = scmp.ne.s32.totalorder (!%p1185_p10), %s1178_s26, 0 }
  0x4c   : > { %230 = sbr.rel (%p1185_p10) target bundleno = 524 (0x20c), region = 40  ;;  %s571_s17 = sshll.u32 (!%p1185_p10), %s1067_s16, 3 }
  0x4d   : > { %s233_s19 = scalar_lea.sflag (!%p1185_p10), [#allocation5], %s1067_s16  ;;  %s1073_s20 = scalar_lea.vmem (!%p1185_p10), [#allocation4], %s571_s17 }
  0x51   : > { %879 = dma.done.wait (%p1186_p4), %s233_s19, 128  }
  0x52   : > { %881 = vsyncadd (%p1186_p4), %s233_s19, 4294967168  ;;  %p1187_p8 = scmp.eq.s32.totalorder %s970_s24, 0 }
  0x54   : > { %883 = dma.done.wait (%p1187_p8), [#allocation8], 4096   ;;  %p1188_p3 = pmov %p1187_p8 }
  0x55   : > { %v911_v0 = vmov 0.0   ;;  %vm912_vm0 = vmmov 0   ;;  %v287_v1 = vld [vmem:[#allocation7 + $0x78] sm:$0xff]  ;;  %v286_v2 = vld [vmem:[#allocation7 + $0x70] sm:$0xff]  ;;  %v285_v3 = vld [vmem:[#allocation7 + $0x68] sm:$0xff]  ;;  %s578_s14 = sshll.u32 %s970_s24, 7 }
  0x56   : > { %885 = vsyncadd (%p1188_p3), [#allocation8], 4294963200  ;;  %615 = vmatprep.subr.mxu0 %v911_v0  ;;  %647 = vmatprep.mubr.msk.f32.mxu0 %vm912_vm0, %v911_v0  ;;  %v284_v4 = vld [vmem:[#allocation7 + $0x60] sm:$0xff]  ;;  %v381_v5 = vld [vmem:[#allocation9 + $0x78] sm:$0xff]  ;;  %s270_s15 = scalar_lea.vmem [#allocation10], %s571_s17  ;;  %s1130_s30 = scalar_lea.hbm %s1173_s6, %s578_s14 }
  0x57   : > { %650 = vmatprep.subr.mxu1 %v911_v0  ;;  %682 = vmatprep.mubr.msk.f32.mxu1 %vm912_vm0, %v911_v0  ;;  %v283_v6 = vld [vmem:[#allocation7 + $0x58] sm:$0xff]  ;;  %v380_v7 = vld [vmem:[#allocation9 + $0x70] sm:$0xff]  ;;  %v379_v8 = vld [vmem:[#allocation9 + $0x68] sm:$0xff]  ;;  %s474_s8 = sshll.u32 %s270_s15, 4  ;;  %s461_s10 = scalar_lea.sflag [#allocation6], %s1067_s16  ;;  %s475_s8 = int_to_ptr.vmem [resolvable:$true] %s474_s8 }
  0x58   : > { %616 = vmatpush3.msra.mxu0 %v287_v1  ;;  %651 = vmatpush3.msra.mxu1 %v381_v5  ;;  %v282_v9 = vld [vmem:[#allocation7 + $0x50] sm:$0xff]  ;;  %v378_v10 = vld [vmem:[#allocation9 + $0x60] sm:$0xff]  ;;  %v281_v11 = vld [vmem:[#allocation7 + $0x48] sm:$0xff]  ;;  %s836_s12 = scalar_lea.vmem %s475_s8, 128  ;;  %p1189_p0 = scmp.ne.s32.totalorder %s1183_s25, 0 }
  0x59   : > { %617 = vmatprep.subr.mxu0 %v911_v0  ;;  %652 = vmatprep.subr.mxu1 %v911_v0  ;;  %v377_v12 = vld [vmem:[#allocation9 + $0x58] sm:$0xff]  ;;  %v280_v13 = vld [vmem:[#allocation7 + $0x40] sm:$0xff]  ;;  %v376_v14 = vld [vmem:[#allocation9 + $0x50] sm:$0xff]  ;;  %p837_p11 = scmp.ne.s32.totalorder %s475_s8, %s836_s12  ;;  %s913_s24 = smov [#allocation10]  }
  0x5a   : > { %618 = vmatpush3.msra.mxu0 %v286_v2  ;;  %653 = vmatpush3.msra.mxu1 %v380_v7  ;;  %v279_v15 = vld [vmem:[#allocation7 + $0x38] sm:$0xff]  ;;  %v375_v16 = vld [vmem:[#allocation9 + $0x48] sm:$0xff]  ;;  %v278_v17 = vld [vmem:[#allocation7 + $0x30] sm:$0xff]  ;;  %s840_s19 = sshll.u32 %s913_s24, 4  ;;  %s841_s19 = int_to_ptr.vmem [resolvable:$false] %s840_s19 }
  0x5b   : > { %619 = vmatprep.subr.mxu0 %v911_v0  ;;  %654 = vmatprep.subr.mxu1 %v911_v0  ;;  %v374_v18 = vld [vmem:[#allocation9 + $0x40] sm:$0xff]  ;;  %v277_v19 = vld [vmem:[#allocation7 + $0x28] sm:$0xff]  ;;  %v373_v20 = vld [vmem:[#allocation9 + $0x38] sm:$0xff]  ;;  %p838_p1 = pnand %p837_p11, %p1189_p0  ;;  %s842_s17 = scalar_lea.vmem %s841_s19, 256 }
  0x5c   : > { %620 = vmatpush3.msra.mxu0 %v285_v3  ;;  %655 = vmatpush3.msra.mxu1 %v379_v8  ;;  %v276_v21 = vld [vmem:[#allocation7 + $0x20] sm:$0xff]  ;;  %v372_v22 = vld [vmem:[#allocation9 + $0x30] sm:$0xff]  ;;  %v275_v23 = vld [vmem:[#allocation7 + $0x18] sm:$0xff]  ;;  %p843_p6 = scmp.lt.s32.totalorder %s475_s8, %s841_s19  ;;  %p844_p12 = scmp.lt.s32.totalorder %s842_s17, %s836_s12 }
  0x5d   : > { %621 = vmatprep.subr.mxu0 %v911_v0  ;;  %656 = vmatprep.subr.mxu1 %v911_v0  ;;  %v371_v24 = vld [vmem:[#allocation9 + $0x28] sm:$0xff]  ;;  %v274_v25 = vld [vmem:[#allocation7 + $0x10] sm:$0xff]  ;;  %v370_v26 = vld [vmem:[#allocation9 + $0x20] sm:$0xff]  ;;  %p839_p2 = pneg %p838_p1 }
  0x5e   : > { %622 = vmatpush3.msra.mxu0 %v284_v4  ;;  %657 = vmatpush3.msra.mxu1 %v378_v10  ;;  %v273_v27 = vld [vmem:[#allocation7 + $0x8] sm:$0xff]  ;;  %v369_v28 = vld [vmem:[#allocation9 + $0x18] sm:$0xff]  ;;  %v272_v29 = vld [vmem:[#allocation7] sm:$0xff]  ;;  %p845_p7 = por %p844_p12, %p843_p6 }
  0x5f   : > { %623 = vmatprep.subr.mxu0 %v911_v0  ;;  %658 = vmatprep.subr.mxu1 %v911_v0  ;;  %v271_v30 = vld [vmem:[%s1073_s20] sm:$0xff]  ;;  %v367_v32 = vld [vmem:[#allocation9 + $0x8] sm:$0xff]  ;;  %v366_v33 = vld [vmem:[#allocation9] sm:$0xff] }
  0x60   : > { %624 = vmatpush3.msra.mxu0 %v283_v6  ;;  %659 = vmatpush3.msra.mxu1 %v377_v12  ;;  %v368_v31 = vld [vmem:[#allocation9 + $0x10] sm:$0xff]  ;;  %p846_p9 = pnand %p845_p7, %p839_p2 }
  0x61   : > { %625 = vmatprep.subr.mxu0 %v911_v0  ;;  %660 = vmatprep.subr.mxu1 %v911_v0  ;;  %v575_v34 = vld [vmem:[%s1170_s3] ss:$0 sm:$0xff] }
  0x62   : > { %626 = vmatpush3.msra.mxu0 %v282_v9  ;;  %661 = vmatpush3.msra.mxu1 %v376_v14  ;;  %v576_v39 = vld [vmem:[%s1172_s5] ss:$0 sm:$0xff] }
  0x63   : > { %627 = vmatprep.subr.mxu0 %v911_v0  ;;  %662 = vmatprep.subr.mxu1 %v911_v0 }
  0x64   : > { %628 = vmatpush3.msra.mxu0 %v281_v11  ;;  %663 = vmatpush3.msra.mxu1 %v375_v16 }
  0x65   : > { %629 = vmatprep.subr.mxu0 %v911_v0  ;;  %664 = vmatprep.subr.mxu1 %v911_v0 }
  0x66   : > { %630 = vmatpush3.msra.mxu0 %v280_v13  ;;  %665 = vmatpush3.msra.mxu1 %v374_v18 }
  0x67   : > { %631 = vmatprep.subr.mxu0 %v911_v0  ;;  %666 = vmatprep.subr.mxu1 %v911_v0 }
  0x68   : > { %632 = vmatpush3.msra.mxu0 %v279_v15  ;;  %667 = vmatpush3.msra.mxu1 %v373_v20 }
  0x69   : > { %633 = vmatprep.subr.mxu0 %v911_v0  ;;  %668 = vmatprep.subr.mxu1 %v911_v0 }
  0x6a   : > { %634 = vmatpush3.msra.mxu0 %v278_v17  ;;  %669 = vmatpush3.msra.mxu1 %v372_v22 }
  0x6b   : > { %635 = vmatprep.subr.mxu0 %v911_v0  ;;  %670 = vmatprep.subr.mxu1 %v911_v0 }
  0x6c   : > { %636 = vmatpush3.msra.mxu0 %v277_v19  ;;  %671 = vmatpush3.msra.mxu1 %v371_v24 }
  0x6d   : > { %637 = vmatprep.subr.mxu0 %v911_v0  ;;  %672 = vmatprep.subr.mxu1 %v911_v0 }
  0x6e   : > { %638 = vmatpush3.msra.mxu0 %v276_v21  ;;  %673 = vmatpush3.msra.mxu1 %v370_v26 }
  0x6f   : > { %639 = vmatprep.subr.mxu0 %v911_v0  ;;  %674 = vmatprep.subr.mxu1 %v911_v0 }
  0x70   : > { %640 = vmatpush3.msra.mxu0 %v275_v23  ;;  %675 = vmatpush3.msra.mxu1 %v369_v28 }
  0x71   : > { %641 = vmatprep.subr.mxu0 %v911_v0  ;;  %676 = vmatprep.subr.mxu1 %v911_v0 }
  0x72   : > { %642 = vmatpush3.msra.mxu0 %v274_v25  ;;  %677 = vmatpush3.msra.mxu1 %v368_v31 }
  0x73   : > { %643 = vmatprep.subr.mxu0 %v911_v0  ;;  %678 = vmatprep.subr.mxu1 %v911_v0 }
  0x74   : > { %644 = vmatpush3.msra.mxu0 %v273_v27  ;;  %679 = vmatpush3.msra.mxu1 %v367_v32 }
  0x75   : > { %645 = vmatprep.subr.mxu0 %v911_v0  ;;  %680 = vmatprep.subr.mxu1 %v911_v0 }
  0x76   : > { %646 = vmatpush3.msra.mxu0 %v272_v29  ;;  %681 = vmatpush3.msra.mxu1 %v366_v33 }
  0x77   : > { %648 = vmatmul.mubr.f32.vlgmr.msra.gmra.mxu0 %v271_v30 }
 0x137   : > { %v361_v35 = vpop.f32.mrf.mxu0 }
 0x138   : > { %v362_v36 = vadd.f32 %v575_v34, %v361_v35 }
 0x139   : > { %v649_v37 = vpop.f32.mrf.mxu0 }
 0x13a   : > { %v365_v38 = vmax.f32 %v362_v36, 0.0 }
 0x13c   : > { %683 = vmatmul.mubr.f32.vlgmr.msra.gmra.mxu1 %v365_v38 }
 0x1fc   : > { %v455_v40 = vpop.f32.mrf.mxu1 }
 0x1fd   : > { %v456_v41 = vadd.f32 %v576_v39, %v455_v40 }
 0x1fe   : > { %v684_v42 = vpop.f32.mrf.mxu1 }
 0x1ff   : > { %459 = vst [vmem:[%s270_s15] sm:$0xff] %v456_v41 }
 0x200   : > { %849 = shalt.err (!%p846_p9)
}
 0x201   : > { %s850_s20 = scalar_lea.hbm %s1130_s30, 128  ;;  %s854_s28 = scalar_lea.hbm %s1173_s6, 256 }
 0x202   : > { %p851_p13 = scmp.ne.s32.totalorder %s1130_s30, %s850_s20  ;;  %p855_p4 = scmp.lt.s32.totalorder %s1130_s30, %s1173_s6 }
 0x203   : > { %p856_p8 = scmp.lt.s32.totalorder %s854_s28, %s850_s20 }
 0x204   : > { %p852_p5 = pnand %p851_p13, %p1189_p0 }
 0x205   : > { %p857_p3 = por %p856_p8, %p855_p4 }
 0x206   : > { %p853_p10 = pneg %p852_p5 }
 0x208   : > { %p858_p11 = pnand %p857_p3, %p853_p10 }
 0x20a   : > { %861 = shalt.err (!%p858_p11)
}
 0x20b   : > { %695 = dma.vmem_to_hbm [thread:$0]  (%p1189_p0), %s475_s8, 128, %s1130_s30, %s461_s10  }
 0x20c PF: > { %s486_s14 = sand.u32 1, %s892_s0   ;;  %p1190_p1 = scmp.ne.s32.totalorder %s1179_s27, 0 }
 0x20d   : > { %p1191_p2 = scmp.ge.s32.totalorder %s904_s23, 2  ;;  %s487_s15 = scalar_lea.sflag [#allocation6], %s486_s14 }
 0x20f   : > { %p709_p6 = pnand %p1191_p2, %p1190_p1 }
 0x211   : > { %p710_p12 = pneg %p709_p6 }
 0x213   : > { %887 = dma.done.wait (%p710_p12), %s487_s15, 128  }
 0x214   : > { %889 = vsyncadd (%p710_p12), %s487_s15, 4294967168  ;;  %p21_p7 = scmp.ge.s32.totalorder %s1021_s18, 4   ;;  %s1192_s0 = smov %s896_s21 }
 0x215   : > { %s1193_s21 = smov %s900_s22  ;;  %s1194_s22 = smov %s1037_s29 }
 0x216   : > { %s1195_s23 = smov %s1021_s18  ;;  %23 = sbr.rel (!%p21_p7) target bundleno = 6 (0x6), region = 93 }
 0x21b   :  { %492 = vsyncpa [#allocation5], 1 }
 0x21c   :  { %494 = vsyncpa [#allocation5 + $0x1], 1 }
 0x21d   :  { %495 = vsyncpa [#allocation8], 1 }
 0x21e   :  { %496 = vsyncpa [#allocation6], 1 }
 0x21f   :  { %498 = vsyncpa [#allocation6 + $0x1], 1 }

</bundles_post_ra>
